<compile_context>
chip_gen: v7x
topology: tpu7x:2x2x1
jax: 0.10.0
libtpu: 0.0.40
codegen_flags: <defaults>
</compile_context>

<pallas_src>
import functools

import jax
import jax.numpy as jnp
from jax.experimental import pallas as pl
from jax.experimental.pallas import tpu as pltpu


LANE = 128
_F_TILE_THRESHOLD = 4096    # reduced lanes; beyond this, add a feature-reduction grid axis
_F_CHUNK = 1024             # lanes per feature chunk on the F-tiled path
_TINY_ELEMS = 1 << 16       # below this, the pure-XLA reference is faster


def _round_up(x, m):
    return ((x + m - 1) // m) * m


def _target_block_bytes():
    """Per-block byte budget (the pipeline double-buffers each block)."""
    try:
        kind = jax.devices()[0].device_kind.lower()
    except Exception:
        kind = ""
    if "v5 lite" in kind or "v5lite" in kind or "v5e" in kind:
        return 2 * 1024 * 1024    # v5e: 16 MiB scoped-VMEM default
    return 4 * 1024 * 1024        # v6e / v7x: 32 MiB scoped-VMEM default


def _pick_block_rows(batch, per_row_bytes, sublane, target_bytes, requested):
    """Batch-tile rows from the byte budget, aligned to the dtype sublane multiple."""
    if requested is not None:
        rows = int(requested)
    else:
        rows = target_bytes // max(1, per_row_bytes)
    if rows >= batch:
        # Keep >=2 batch tiles when possible so both v7x TensorCores get a
        # "parallel" slice of the grid (free on single-TC v5e/v6e).
        if batch >= 2 * sublane:
            rows = _round_up((batch + 1) // 2, sublane)
            if rows >= batch:
                rows = batch
        else:
            rows = batch
    else:
        rows = max(sublane, (rows // sublane) * sublane)
    return rows


def _one_hot_assemble(mins, fill, out_dtype):
    """Place mins[g] (TB, 1) into lane g of a (TB, G) tile without concatenate."""
    num_groups = len(mins)
    if num_groups == 1:
        return mins[0].astype(out_dtype)
    lane_id = jax.lax.broadcasted_iota(jnp.int32, (1, num_groups), 1)
    out = jnp.where(lane_id == 0, mins[0], jnp.asarray(fill, mins[0].dtype))
    for g in range(1, num_groups):
        out = jnp.where(lane_id == g, mins[g], out)
    return out.astype(out_dtype)


def _min_layer_kernel(bounds, f_block, fill, x_ref, o_ref):
    """Single feature block: static lane-aligned per-group windows."""
    mins = []
    for lo, hi in bounds:
        lo_a = (lo // LANE) * LANE
        hi_a = min(_round_up(hi, LANE), f_block)
        window = x_ref[:, lo_a:hi_a]                      # static, lane-aligned slice
        if lo != lo_a or hi != hi_a:                      # mask boundary lanes only
            col = lo_a + jax.lax.broadcasted_iota(jnp.int32, (1, hi_a - lo_a), 1)
            keep = jnp.logical_and(col >= lo, col < hi)
            window = jnp.where(keep, window, fill)
        mins.append(jnp.min(window, axis=1, keepdims=True))
    o_ref[...] = _one_hot_assemble(mins, fill, o_ref.dtype)


def _min_layer_kernel_ftiled(bounds, f_chunk, fill, x_ref, o_ref):
    """Feature-tiled path: o_ref is the resident running-min accumulator."""
    k = pl.program_id(1)

    @pl.when(k == 0)
    def _init():
        o_ref[...] = jnp.full(o_ref.shape, fill, o_ref.dtype)

    x = x_ref[...]                                         # (TB, f_chunk)
    col = k * f_chunk + jax.lax.broadcasted_iota(jnp.int32, (1, f_chunk), 1)
    mins = []
    for lo, hi in bounds:                                  # bounds are Python-static
        keep = jnp.logical_and(col >= lo, col < hi)
        mins.append(jnp.min(jnp.where(keep, x, fill), axis=1, keepdims=True))
    o_ref[...] = jnp.minimum(o_ref[...], _one_hot_assemble(mins, fill, o_ref.dtype))


def min_layer_reference(x, group_sizes):
    """Pure-JAX reference (also the preferred path for tiny shapes)."""
    outs, start = [], 0
    for gs in group_sizes:
        outs.append(jnp.min(x[:, start:start + gs], axis=1, keepdims=True))
        start += gs
    return jnp.concatenate(outs, axis=1)


def min_layer(x, group_sizes, *, block_rows=None, use_pallas=None):
    """Pallas wrapper reproducing MinLayer.forward."""
    group_sizes = tuple(int(g) for g in group_sizes)
    assert group_sizes and all(g > 0 for g in group_sizes), "group sizes must be >= 1"
    num_groups = len(group_sizes)
    B, F = x.shape
    f_used = sum(group_sizes)
    assert f_used <= F, "group_sizes must fit inside the feature dim"

    bounds, lo = [], 0
    for gs in group_sizes:
        bounds.append((lo, lo + gs))
        lo += gs
    bounds = tuple(bounds)

    dtype = jnp.dtype(x.dtype)
    if jnp.issubdtype(dtype, jnp.floating):
        fill = float("inf")                       # true min identity (handles all-+inf groups)
    else:
        fill = int(jnp.iinfo(dtype).max)
    itemsize = dtype.itemsize
    sublane = 8 * max(1, 4 // itemsize)           # 8 (f32) / 16 (bf16) / 32 (int8)

    # Only DMA the reduced columns, padded to a lane multiple (or full F).
    f_block = F if f_used == F else min(_round_up(f_used, LANE), F)

    if use_pallas is None:                        # tiny problems: XLA beats kernel launch
        use_pallas = B * f_block >= _TINY_ELEMS
    if not use_pallas:
        return min_layer_reference(x, group_sizes)

    target_bytes = _target_block_bytes()
    out_lanes = _round_up(num_groups, LANE)       # lane-padded VMEM footprint of out block

    cost = pl.CostEstimate(
        flops=B * f_used,                         # ~one compare per reduced element
        transcendentals=0,
        bytes_accessed=B * f_block * itemsize + B * num_groups * itemsize,
    )

    if f_block > _F_TILE_THRESHOLD:
        # Wide-feature path: 2-D grid, feature axis is an in-VMEM running-min reduction.
        f_chunk = _F_CHUNK
        per_row = (f_chunk + out_lanes) * itemsize
        rows = _pick_block_rows(B, per_row, sublane, target_bytes, block_rows)
        grid = (pl.cdiv(B, rows), pl.cdiv(f_block, f_chunk))
        kernel = functools.partial(_min_layer_kernel_ftiled, bounds, f_chunk, fill)
        in_specs = [pl.BlockSpec((rows, f_chunk), lambda i, k: (i, k))]
        out_spec = pl.BlockSpec((rows, num_groups), lambda i, k: (i, 0))
        dims = ("parallel", "arbitrary")
    else:
        per_row = (_round_up(f_block, LANE) + out_lanes) * itemsize
        rows = _pick_block_rows(B, per_row, sublane, target_bytes, block_rows)
        grid = (pl.cdiv(B, rows),)
        kernel = functools.partial(_min_layer_kernel, bounds, f_block, fill)
        in_specs = [pl.BlockSpec((rows, f_block), lambda i: (i, 0))]
        out_spec = pl.BlockSpec((rows, num_groups), lambda i: (i, 0))
        dims = ("parallel",)

    return pl.pallas_call(
        kernel,
        out_shape=jax.ShapeDtypeStruct((B, num_groups), x.dtype),
        grid=grid,
        in_specs=in_specs,
        out_specs=out_spec,
        compiler_params=pltpu.CompilerParams(dimension_semantics=dims),
        cost_estimate=cost,
    )(x)


if __name__ == "__main__":
    key = jax.random.PRNGKey(0)
    k1, k2 = jax.random.split(key)

    # 1) Module-sized config (3 groups of sizes 3/5/8 over 16 features), forced
    #    through the Pallas path; auto tiling yields 2 parallel batch tiles.
    group_sizes = [3, 5, 8]
    B, F = 64, 16
    x = jax.random.normal(k1, (B, F), dtype=jnp.float32)
    out = jax.block_until_ready(min_layer(x, group_sizes, use_pallas=True))
    ref = min_layer_reference(x, group_sizes)
    assert out.shape == (B, len(group_sizes)), out.shape
    assert jnp.allclose(out, ref), (out, ref)

    # 2) Wide-feature config exercising the feature-reduction (F-tiled) grid path.
    group_sizes_wide = [130] * 33            # f_used = 4290 -> f_block = 4352 > 4096
    B2, F2 = 64, 4352
    x2 = jax.random.normal(k2, (B2, F2), dtype=jnp.float32)
    out2 = jax.block_until_ready(min_layer(x2, group_sizes_wide, use_pallas=True))
    ref2 = min_layer_reference(x2, group_sizes_wide)
    assert out2.shape == (B2, len(group_sizes_wide)), out2.shape
    assert jnp.allclose(out2, ref2), "F-tiled path mismatch"

    print("KERNEL_OK")
</pallas_src>

<mosaic_0001>
module attributes {stable_mosaic.version = 11 : i64} {
  func.func @_min_layer_kernel(%arg0: i32, %arg1: memref<32x16xf32, #tpu.memory_space<vmem>>, %arg2: memref<32x3xf32, #tpu.memory_space<vmem>>) attributes {dimension_semantics = [#tpu.dimension_semantics<parallel>], iteration_bounds = array<i64: 2>, scalar_prefetch = 0 : i64, scratch_operands = 0 : i64, tpu.core_type = #tpu.core_type<tc>, window_params = [{transform_indices = @transform_0, window_bounds = array<i64: 32, 16>}, {transform_indices = @transform_1, window_bounds = array<i64: 32, 3>}]} {
    %c0 = arith.constant 0 : index
    %c0_0 = arith.constant 0 : index
    %0 = vector.load %arg1[%c0, %c0_0] : memref<32x16xf32, #tpu.memory_space<vmem>>, vector<32x16xf32>
    %1 = tpu.iota {dimensions = array<i32: 1>} : vector<1x16xi32>
    %c0_i32 = arith.constant 0 : i32
    %2 = vector.broadcast %c0_i32 : i32 to vector<1x16xi32>
    %3 = arith.addi %2, %1 : vector<1x16xi32>
    %c0_i32_1 = arith.constant 0 : i32
    %4 = vector.broadcast %c0_i32_1 : i32 to vector<1x16xi32>
    %5 = arith.cmpi sge, %3, %4 : vector<1x16xi32>
    %c3_i32 = arith.constant 3 : i32
    %6 = vector.broadcast %c3_i32 : i32 to vector<1x16xi32>
    %7 = arith.cmpi slt, %3, %6 : vector<1x16xi32>
    %8 = arith.andi %5, %7 : vector<1x16xi1>
    %cst = arith.constant 0x7F800000 : f32
    %9 = vector.shape_cast %8 : vector<1x16xi1> to vector<1x16xi1>
    %10 = vector.broadcast %9 : vector<1x16xi1> to vector<32x16xi1>
    %11 = vector.broadcast %cst : f32 to vector<32x16xf32>
    %12 = arith.select %10, %0, %11 : vector<32x16xi1>, vector<32x16xf32>
    %cst_2 = arith.constant dense<0x7F800000> : vector<32xf32>
    %13 = vector.multi_reduction <minimumf>, %12, %cst_2 [1] : vector<32x16xf32> to vector<32xf32>
    %14 = vector.shape_cast %13 : vector<32xf32> to vector<32x1xf32>
    %c0_3 = arith.constant 0 : index
    %c0_4 = arith.constant 0 : index
    %15 = vector.load %arg1[%c0_3, %c0_4] : memref<32x16xf32, #tpu.memory_space<vmem>>, vector<32x16xf32>
    %16 = tpu.iota {dimensions = array<i32: 1>} : vector<1x16xi32>
    %c0_i32_5 = arith.constant 0 : i32
    %17 = vector.broadcast %c0_i32_5 : i32 to vector<1x16xi32>
    %18 = arith.addi %17, %16 : vector<1x16xi32>
    %c3_i32_6 = arith.constant 3 : i32
    %19 = vector.broadcast %c3_i32_6 : i32 to vector<1x16xi32>
    %20 = arith.cmpi sge, %18, %19 : vector<1x16xi32>
    %c8_i32 = arith.constant 8 : i32
    %21 = vector.broadcast %c8_i32 : i32 to vector<1x16xi32>
    %22 = arith.cmpi slt, %18, %21 : vector<1x16xi32>
    %23 = arith.andi %20, %22 : vector<1x16xi1>
    %cst_7 = arith.constant 0x7F800000 : f32
    %24 = vector.shape_cast %23 : vector<1x16xi1> to vector<1x16xi1>
    %25 = vector.broadcast %24 : vector<1x16xi1> to vector<32x16xi1>
    %26 = vector.broadcast %cst_7 : f32 to vector<32x16xf32>
    %27 = arith.select %25, %15, %26 : vector<32x16xi1>, vector<32x16xf32>
    %cst_8 = arith.constant dense<0x7F800000> : vector<32xf32>
    %28 = vector.multi_reduction <minimumf>, %27, %cst_8 [1] : vector<32x16xf32> to vector<32xf32>
    %29 = vector.shape_cast %28 : vector<32xf32> to vector<32x1xf32>
    %c0_9 = arith.constant 0 : index
    %c0_10 = arith.constant 0 : index
    %30 = vector.load %arg1[%c0_9, %c0_10] : memref<32x16xf32, #tpu.memory_space<vmem>>, vector<32x16xf32>
    %31 = tpu.iota {dimensions = array<i32: 1>} : vector<1x16xi32>
    %c0_i32_11 = arith.constant 0 : i32
    %32 = vector.broadcast %c0_i32_11 : i32 to vector<1x16xi32>
    %33 = arith.addi %32, %31 : vector<1x16xi32>
    %c8_i32_12 = arith.constant 8 : i32
    %34 = vector.broadcast %c8_i32_12 : i32 to vector<1x16xi32>
    %35 = arith.cmpi sge, %33, %34 : vector<1x16xi32>
    %c16_i32 = arith.constant 16 : i32
    %36 = vector.broadcast %c16_i32 : i32 to vector<1x16xi32>
    %37 = arith.cmpi slt, %33, %36 : vector<1x16xi32>
    %38 = arith.andi %35, %37 : vector<1x16xi1>
    %cst_13 = arith.constant 0x7F800000 : f32
    %39 = vector.shape_cast %38 : vector<1x16xi1> to vector<1x16xi1>
    %40 = vector.broadcast %39 : vector<1x16xi1> to vector<32x16xi1>
    %41 = vector.broadcast %cst_13 : f32 to vector<32x16xf32>
    %42 = arith.select %40, %30, %41 : vector<32x16xi1>, vector<32x16xf32>
    %cst_14 = arith.constant dense<0x7F800000> : vector<32xf32>
    %43 = vector.multi_reduction <minimumf>, %42, %cst_14 [1] : vector<32x16xf32> to vector<32xf32>
    %44 = vector.shape_cast %43 : vector<32xf32> to vector<32x1xf32>
    %45 = tpu.iota {dimensions = array<i32: 1>} : vector<1x3xi32>
    %c0_i32_15 = arith.constant 0 : i32
    %46 = vector.broadcast %c0_i32_15 : i32 to vector<1x3xi32>
    %47 = arith.cmpi eq, %45, %46 : vector<1x3xi32>
    %cst_16 = arith.constant 0x7F800000 : f32
    %48 = vector.shape_cast %47 : vector<1x3xi1> to vector<1x3xi1>
    %49 = vector.broadcast %48 : vector<1x3xi1> to vector<32x3xi1>
    %50 = vector.shape_cast %14 : vector<32x1xf32> to vector<32x1xf32>
    %51 = vector.broadcast %50 : vector<32x1xf32> to vector<32x3xf32>
    %52 = vector.broadcast %cst_16 : f32 to vector<32x3xf32>
    %53 = arith.select %49, %51, %52 : vector<32x3xi1>, vector<32x3xf32>
    %c1_i32 = arith.constant 1 : i32
    %54 = vector.broadcast %c1_i32 : i32 to vector<1x3xi32>
    %55 = arith.cmpi eq, %45, %54 : vector<1x3xi32>
    %56 = vector.shape_cast %55 : vector<1x3xi1> to vector<1x3xi1>
    %57 = vector.broadcast %56 : vector<1x3xi1> to vector<32x3xi1>
    %58 = vector.shape_cast %29 : vector<32x1xf32> to vector<32x1xf32>
    %59 = vector.broadcast %58 : vector<32x1xf32> to vector<32x3xf32>
    %60 = arith.select %57, %59, %53 : vector<32x3xi1>, vector<32x3xf32>
    %c2_i32 = arith.constant 2 : i32
    %61 = vector.broadcast %c2_i32 : i32 to vector<1x3xi32>
    %62 = arith.cmpi eq, %45, %61 : vector<1x3xi32>
    %63 = vector.shape_cast %62 : vector<1x3xi1> to vector<1x3xi1>
    %64 = vector.broadcast %63 : vector<1x3xi1> to vector<32x3xi1>
    %65 = vector.shape_cast %44 : vector<32x1xf32> to vector<32x1xf32>
    %66 = vector.broadcast %65 : vector<32x1xf32> to vector<32x3xf32>
    %67 = arith.select %64, %66, %60 : vector<32x3xi1>, vector<32x3xf32>
    %c0_17 = arith.constant 0 : index
    %c0_18 = arith.constant 0 : index
    %68 = vector.load %arg2[%c0_17, %c0_18] : memref<32x3xf32, #tpu.memory_space<vmem>>, vector<32x3xf32>
    tpu.vector_store %arg2[%c0_17, %c0_18], %67 {strides = array<i32>} : memref<32x3xf32, #tpu.memory_space<vmem>>, vector<32x3xf32>,
    return
  }
  func.func @transform_0(%arg0: i32) -> (i32, i32) {
    %c0_i32 = arith.constant 0 : i32
    %c0_i32_0 = arith.constant 0 : i32
    return %arg0, %c0_i32 : i32, i32
  }
  func.func @transform_1(%arg0: i32) -> (i32, i32) {
    %c0_i32 = arith.constant 0 : i32
    %c0_i32_0 = arith.constant 0 : i32
    return %arg0, %c0_i32 : i32, i32
  }
}

</mosaic_0001>

<bundles_post_ra>
// kernel: tpu_custom_call.1
= control target key start
LH: loop header
LB: loop body
LE: loop exit
PB: predicated region body
PF: predicated region fallthrough
CT: control target
= control target key end

     0   :  { %s309_s6 = smov 0   ;;  %s415_s0 = inlined_call_operand.vmem [shape: f32[64,16], index: 0, kind: input, shape index: {}]   ;;  %s416_s1 = inlined_call_operand.vmem [shape: f32[64,3], index: 1, kind: output, shape index: {}]  }
   0x1 LB: > { %s272_s7 = sadd.s32 4294967295, %s297_s6   ;;  %p276_p0 = scmp.ge.s32.totalorder %s297_s6, 1  ;;  %s297_s6 = sphi %s309_s6, %s11_s6  }
   0x2   : > { %p88_p1 = scmp.lt.s32.totalorder %s297_s6, 3 }
   0x4   : > { %p89_p2 = pnand %p276_p0, %p88_p1 }
   0x5   : > { %s277_s8 = sshll.u32 (!%p89_p2), %s272_s7, 2  ;;  %v124_v0 = vlaneseq (!%p89_p2)  ;;  %vm135_vm4 = vcmask (!%p89_p2), 130048   ;;  %vm211_vm11 = vcmask (!%p89_p2), 23552  }
   0x6   : > { %92 = sbr.rel (%p89_p2) target bundleno = 183 (0xb7), region = 24  ;;  %p109_p3 = scmp.lt.s32.totalorder (!%p89_p2), %s277_s8, 7 }
   0x7   : > { %v317_v1 = vand.u32 (!%p89_p2), 127, %v124_v0 }
   0x9   : > { %vm148_vm0 = vcmp.ge.s32.totalorder (!%p89_p2), %v317_v1, 3  ;;  %vm149_vm1 = vcmp.lt.s32.totalorder (!%p89_p2), %v317_v1, 8  ;;  %vm127_vm3 = vcmp.lt.s32.totalorder (!%p89_p2), %v317_v1, 3  ;;  %vm169_vm5 = vcmp.ge.s32.totalorder (!%p89_p2), %v317_v1, 8 }
   0xa   : > { %vm324_vm2 = vmand (!%p89_p2), %vm148_vm0, %vm149_vm1  ;;  %vm170_vm6 = vcmp.lt.s32.totalorder (!%p89_p2), %v317_v1, 16  ;;  %vm190_vm8 = vcmp.eq.s32.totalorder (!%p89_p2), %v317_v1, 0  ;;  %vm197_vm9 = vcmp.eq.s32.totalorder (!%p89_p2), %v317_v1, 1  ;;  %vm204_vm10 = vcmp.eq.s32.totalorder (!%p89_p2), %v317_v1, 2 }
   0xb   : > { %vm346_vm7 = vmand (!%p89_p2), %vm169_vm5, %vm170_vm6 }
   0xd   : > { %s422_s8 = smov (!%p109_p3, %s277_s8), 7 }
   0xe   : > { %s278_s9 = sshll.u32 %s422_s8, 3 }
   0xf   : > { %s112_s12 = scalar_lea.vmem %s415_s0, %s278_s9  ;;  %s118_s15 = scalar_lea.vmem %s416_s1, %s278_s9 }
  0x10   : > { %v120_v3 = vld [vmem:[%s112_s12] sm:$0xff]  ;;  %v122_v4 = vld [vmem:[%s112_s12 + $0x10] sm:$0xff]  ;;  %v121_v5 = vld [vmem:[%s112_s12 + $0x8] sm:$0xff] }
  0x11   : > { %v153_v6 = vsel %vm324_vm2, %v120_v3, inf  ;;  %v131_v7 = vsel %vm127_vm3, %v120_v3, inf  ;;  %v133_v8 = vsel %vm127_vm3, %v122_v4, inf  ;;  %v132_v9 = vsel %vm127_vm3, %v121_v5, inf  ;;  %v123_v17 = vld [vmem:[%s112_s12 + $0x18] sm:$0xff] }
  0x12   : > { %v157_v10 = vsel %vm135_vm4, %v153_v6, inf  ;;  %v136_v11 = vsel %vm135_vm4, %v131_v7, inf  ;;  %v142_v13 = vsel %vm135_vm4, %v133_v8, inf  ;;  %v139_v14 = vsel %vm135_vm4, %v132_v9, inf }
  0x13   : > { %158 = vmin.xlane.f32.xlu1 %v157_v10  ;;  %137 = vmin.xlane.f32.xlu0 %v136_v11  ;;  %v174_v15 = vsel %vm346_vm7, %v120_v3, inf  ;;  %v154_v16 = vsel %vm324_vm2, %v121_v5, inf  ;;  %v155_v20 = vsel %vm324_vm2, %v122_v4, inf  ;;  %v134_v21 = vsel %vm127_vm3, %v123_v17, inf }
  0x14   : > { %v178_v18 = vsel %vm135_vm4, %v174_v15, inf  ;;  %v160_v19 = vsel %vm135_vm4, %v154_v16, inf  ;;  %v163_v22 = vsel %vm135_vm4, %v155_v20, inf  ;;  %v145_v23 = vsel %vm135_vm4, %v134_v21, inf }
  0x15   : > { %v156_v24 = vsel %vm324_vm2, %v123_v17, inf  ;;  %v175_v25 = vsel %vm346_vm7, %v121_v5, inf  ;;  %v177_v28 = vsel %vm346_vm7, %v123_v17, inf  ;;  %v176_v29 = vsel %vm346_vm7, %v122_v4, inf }
  0x16   : > { %v166_v26 = vsel %vm135_vm4, %v156_v24, inf  ;;  %v181_v27 = vsel %vm135_vm4, %v175_v25, inf  ;;  %v187_v30 = vsel %vm135_vm4, %v177_v28, inf  ;;  %v184_v31 = vsel %vm135_vm4, %v176_v29, inf }
  0x17   : > { %143 = vmin.xlane.f32.xlu1 %v142_v13  ;;  %140 = vmin.xlane.f32.xlu0 %v139_v14 }
  0x1b   : > { %179 = vmin.xlane.f32.xlu1 %v178_v18  ;;  %161 = vmin.xlane.f32.xlu0 %v160_v19 }
  0x1f   : > { %164 = vmin.xlane.f32.xlu1 %v163_v22  ;;  %146 = vmin.xlane.f32.xlu0 %v145_v23 }
  0x23   : > { %167 = vmin.xlane.f32.xlu1 %v166_v26  ;;  %182 = vmin.xlane.f32.xlu0 %v181_v27 }
  0x27   : > { %188 = vmin.xlane.f32.xlu1 %v187_v30  ;;  %185 = vmin.xlane.f32.xlu0 %v184_v31 }
  0xa0   : > { %v159_v32 = vpop.xlane.xlu1 %158  ;;  %v138_v33 = vpop.xlane.xlu0 %137 }
  0xa1   : > { %v193_v36 = vsel %vm190_vm8, %v138_v33, inf }
  0xa2   : > { %v200_v37 = vsel %vm197_vm9, %v159_v32, %v193_v36 }
  0xa4   : > { %v144_v34 = vpop.xlane.xlu1 %143  ;;  %v141_v35 = vpop.xlane.xlu0 %140 }
  0xa5   : > { %v194_v43 = vsel %vm190_vm8, %v141_v35, inf  ;;  %v195_v48 = vsel %vm190_vm8, %v144_v34, inf }
  0xa8   : > { %v180_v38 = vpop.xlane.xlu1 %179  ;;  %v162_v39 = vpop.xlane.xlu0 %161 }
  0xa9   : > { %v207_v40 = vsel %vm204_vm10, %v180_v38, %v200_v37  ;;  %v201_v44 = vsel %vm197_vm9, %v162_v39, %v194_v43 }
  0xaa   : > { %212 = vst.msk [vmem:[%s118_s15] sm:$0xff] %vm211_vm11, %v207_v40 }
  0xac   : > { %v165_v41 = vpop.xlane.xlu1 %164  ;;  %v147_v42 = vpop.xlane.xlu0 %146 }
  0xad   : > { %v196_v49 = vsel %vm190_vm8, %v147_v42, inf  ;;  %v202_v50 = vsel %vm197_vm9, %v165_v41, %v195_v48 }
  0xb0   : > { %v168_v45 = vpop.xlane.xlu1 %167  ;;  %v183_v46 = vpop.xlane.xlu0 %182 }
  0xb1   : > { %v208_v47 = vsel %vm204_vm10, %v183_v46, %v201_v44  ;;  %v203_v51 = vsel %vm197_vm9, %v168_v45, %v196_v49 }
  0xb2   : > { %213 = vst.msk [vmem:[%s118_s15 + $0x8] sm:$0xff] %vm211_vm11, %v208_v47 }
  0xb4   : > { %v189_v52 = vpop.xlane.xlu1 %188  ;;  %v186_v53 = vpop.xlane.xlu0 %185 }
  0xb5   : > { %v210_v54 = vsel %vm204_vm10, %v189_v52, %v203_v51  ;;  %v209_v55 = vsel %vm204_vm10, %v186_v53, %v202_v50 }
  0xb6   : > { %214 = vst.msk [vmem:[%s118_s15 + $0x10] sm:$0xff] %vm211_vm11, %v209_v55  ;;  %215 = vst.msk [vmem:[%s118_s15 + $0x18] sm:$0xff] %vm211_vm11, %v210_v54 }
  0xb7 PF: > { %s11_s6 = sadd.s32 1, %s297_s6  }
  0xb8   : > { %p8_p4 = scmp.ge.s32.totalorder %s11_s6, 4  }
  0xba   :  { %10 = sbr.rel (!%p8_p4) target bundleno = 1 (0x1), region = 54 }

</bundles_post_ra>
